<compile_context>
chip_gen: v7x
topology: tpu7x:2x2x1
jax: 0.10.0
libtpu: 0.0.40
codegen_flags: <defaults>
</compile_context>

<pallas_src>
import jax
import jax.numpy as jnp
from jax import lax
from jax.experimental import pallas as pl
from jax.experimental.pallas import tpu as pltpu


# 3x3 taps of a (30, 30) zero-padded image, flattened row-major: offset = 30*kh + kw
_TAP_OFFSETS = tuple(30 * kh + kw for kh in range(3) for kw in range(3))
_QDIM = 1024   # flattened 30x30 spatial domain (900) padded up to a lane multiple
_XDIM = 1152   # input width >= _QDIM + max tap offset (62), multiple of 128


# ----------------------------------------------------------------------------
# Fused Pallas kernel: im2col + conv + bias + ReLU + FC, per block of G images
# ----------------------------------------------------------------------------
def fused_cnn_kernel(x_ref, cw_ref, cb_ref, fw_ref, fb_ref, o_ref):
    # x_ref : (G, 1152)        f32  VMEM  zero-padded, flattened 30x30 images
    # cw_ref: (NF*9,)          f32  SMEM  conv filter taps (row c: taps c*9..c*9+8)
    # cb_ref: (NF,)            f32  SMEM  conv bias
    # fw_ref: (NF, 10, 1024)   bf16 VMEM  per-channel FC weight, q-padded w/ zeros
    # fb_ref: (1, 10)          f32  VMEM  FC bias
    # o_ref : (G, 10)          f32  VMEM
    x = x_ref[...]                                            # (G, 1152) f32
    # In-kernel im2col: 9 shifted windows of the padded image, reused by every
    # output channel.  Static lane slices; q in [0, 1024).
    taps = [x[:, s:s + _QDIM] for s in _TAP_OFFSETS]          # 9 x (G, 1024) f32

    n_taps = len(_TAP_OFFSETS)
    n_chan = fw_ref.shape[0]

    def body(c, acc):
        # Conv for channel c over the whole padded q-domain (f32 FMAs on the VPU).
        z = taps[0] * cw_ref[c * n_taps + 0]
        for t in range(1, n_taps):
            z = z + taps[t] * cw_ref[c * n_taps + t]
        z = jnp.maximum(z + cb_ref[c], 0.0)                   # bias + ReLU, f32
        # FC contribution of channel c: (G, 1024) x (10, 1024)^T on the MXU.
        # Invalid / padded q positions carry zero FC weight, so they contribute 0.
        part = lax.dot_general(
            z.astype(jnp.bfloat16), fw_ref[c],
            dimension_numbers=(((1,), (1,)), ((), ())),
            preferred_element_type=jnp.float32)               # (G, 10) f32
        return acc + part

    acc = lax.fori_loop(0, n_chan, body, jnp.zeros(o_ref.shape, jnp.float32))
    o_ref[...] = acc + fb_ref[...]


# ----------------------------------------------------------------------------
# One-time parameter preparation (outside the jitted forward)
# ----------------------------------------------------------------------------
def prepare_params(params):
    conv_w, conv_b, fc_w, fc_b = params
    nf = conv_w.shape[0]
    nc = fc_w.shape[0]
    n_taps = len(_TAP_OFFSETS)

    cw_flat = conv_w.reshape(nf, n_taps).astype(jnp.float32).reshape(nf * n_taps)
    cb = conv_b.astype(jnp.float32)

    # fc_w column k = c*784 + 28*h + w  ->  per-channel q = 30*h + w (q-padded),
    # zeros at padded positions so the kernel's padded conv columns contribute 0.
    fw = fc_w.reshape(nc, nf, 28, 28).astype(jnp.float32)
    fw = jnp.pad(fw, ((0, 0), (0, 0), (0, 2), (0, 2)))        # (nc, nf, 30, 30)
    fw = fw.reshape(nc, nf, 900)
    fw = jnp.pad(fw, ((0, 0), (0, 0), (0, _QDIM - 900)))      # (nc, nf, 1024)
    fw3 = jnp.transpose(fw, (1, 0, 2)).astype(jnp.bfloat16)   # (nf, nc, 1024)

    fb2 = fc_b.reshape(1, nc).astype(jnp.float32)
    return cw_flat, cb, fw3, fb2


# ----------------------------------------------------------------------------
# Forward wrapper
# ----------------------------------------------------------------------------
def cnn_1lay_fulltrain_forward(x, prepared):
    cw_flat, cb, fw3, fb2 = prepared
    B, C, H, W = x.shape
    assert C == 1 and H == 28 and W == 28
    nf = fw3.shape[0]
    nc = fw3.shape[1]

    G = min(B, 8)                                   # images per grid step
    Bp = ((B + G - 1) // G) * G

    # Zero-pad spatially (stride-1, pad-1 conv) and flatten 30x30 -> 900,
    # then pad lanes out to 1152 so all 9 shifted 1024-wide taps are in-bounds.
    xp = jnp.pad(x[:, 0], ((0, 0), (1, 1), (1, 1)))           # (B, 30, 30) f32
    xf = xp.reshape(B, 900)
    xf = jnp.pad(xf, ((0, Bp - B), (0, _XDIM - 900)))         # (Bp, 1152) f32

    out = pl.pallas_call(
        fused_cnn_kernel,
        out_shape=jax.ShapeDtypeStruct((Bp, nc), jnp.float32),
        grid=(Bp // G,),
        in_specs=[
            pl.BlockSpec((G, _XDIM), lambda i: (i, 0)),                 # images
            pl.BlockSpec(memory_space=pltpu.MemorySpace.SMEM),          # conv w
            pl.BlockSpec(memory_space=pltpu.MemorySpace.SMEM),          # conv b
            pl.BlockSpec((nf, nc, _QDIM), lambda i: (0, 0, 0)),         # fc w (pinned)
            pl.BlockSpec((1, nc), lambda i: (0, 0)),                    # fc b (pinned)
        ],
        out_specs=pl.BlockSpec((G, nc), lambda i: (i, 0)),
        compiler_params=pltpu.CompilerParams(
            dimension_semantics=("parallel",),
            vmem_limit_bytes=32 * 1024 * 1024),
    )(xf, cw_flat, cb, fw3, fb2)
    return out[:B]


# ----------------------------------------------------------------------------
# Pure-JAX reference (f32 conv, bf16-operand FC with f32 accumulation)
# ----------------------------------------------------------------------------
def reference_forward(x, params):
    conv_w, conv_b, fc_w, fc_b = params
    B = x.shape[0]
    nf = conv_w.shape[0]
    c1 = lax.conv_general_dilated(
        x, conv_w, window_strides=(1, 1), padding=((1, 1), (1, 1)),
        dimension_numbers=("NCHW", "OIHW", "NCHW"))
    c1 = jnp.maximum(c1 + conv_b.reshape(1, nf, 1, 1), 0.0)
    x_flat = c1.reshape(B, -1).astype(jnp.bfloat16)
    out = lax.dot_general(
        x_flat, fc_w.astype(jnp.bfloat16),
        dimension_numbers=(((1,), (1,)), ((), ())),
        preferred_element_type=jnp.float32)
    return out + fc_b.astype(jnp.float32)


# ----------------------------------------------------------------------------
# Main
# ----------------------------------------------------------------------------
if __name__ == "__main__":
    # Module hyperparams (forward hard-codes 28x28 spatial and nf=64).
    B, IN_CHAN, H, W = 2, 1, 28, 28
    NF, FD, NUM_CLASSES = 64, 3, 10

    key = jax.random.PRNGKey(0)
    k_x, k_cw, k_cb, k_fw, k_fb = jax.random.split(key, 5)

    x = jax.random.normal(k_x, (B, IN_CHAN, H, W), dtype=jnp.float32)

    conv_w = 0.1 * jax.random.normal(k_cw, (NF, IN_CHAN, FD, FD), dtype=jnp.float32)
    conv_b = 0.1 * jax.random.normal(k_cb, (NF,), dtype=jnp.float32)
    fc_w = 0.01 * jax.random.normal(k_fw, (NUM_CLASSES, 28 * 28 * NF), dtype=jnp.float32)
    fc_b = 0.01 * jax.random.normal(k_fb, (NUM_CLASSES,), dtype=jnp.float32)
    params = (conv_w, conv_b, fc_w, fc_b)

    prepared = prepare_params(params)               # one-time, outside jit
    fwd = jax.jit(cnn_1lay_fulltrain_forward)
    out = jax.block_until_ready(fwd(x, prepared))

    ref = jax.block_until_ready(reference_forward(x, params))
    assert out.shape == (B, NUM_CLASSES), out.shape
    max_err = jnp.max(jnp.abs(out - ref))
    assert jnp.allclose(out, ref, atol=1e-2, rtol=1e-2), f"max abs err = {max_err}"

    print("KERNEL_OK")
</pallas_src>

<mosaic_0001>
module attributes {stable_mosaic.version = 11 : i64} {
  func.func @fused_cnn_kernel(%arg0: i32, %arg1: memref<2x1152xf32, #tpu.memory_space<vmem>>, %arg2: memref<576xf32, #tpu.memory_space<smem>>, %arg3: memref<64xf32, #tpu.memory_space<smem>>, %arg4: memref<64x10x1024xbf16, #tpu.memory_space<vmem>>, %arg5: memref<1x10xf32, #tpu.memory_space<vmem>>, %arg6: memref<2x10xf32, #tpu.memory_space<vmem>>) attributes {dimension_semantics = [#tpu.dimension_semantics<parallel>], iteration_bounds = array<i64: 1>, scalar_prefetch = 0 : i64, scratch_operands = 0 : i64, tpu.core_type = #tpu.core_type<tc>, window_params = [{transform_indices = @transform_0, window_bounds = array<i64: 2, 1152>}, {transform_indices = @transform_1, window_bounds = array<i64: 576>}, {transform_indices = @transform_2, window_bounds = array<i64: 64>}, {pipeline_mode = #tpu.pipeline_mode<synchronous>, transform_indices = @transform_3, window_bounds = array<i64: 64, 10, 1024>}, {pipeline_mode = #tpu.pipeline_mode<synchronous>, transform_indices = @transform_4, window_bounds = array<i64: 1, 10>}, {transform_indices = @transform_5, window_bounds = array<i64: 2, 10>}]} {
    %c0 = arith.constant 0 : index
    %c0_0 = arith.constant 0 : index
    %0 = vector.load %arg1[%c0, %c0_0] : memref<2x1152xf32, #tpu.memory_space<vmem>>, vector<2x1152xf32>
    %1 = vector.extract_strided_slice %0 {offsets = [0, 0], sizes = [2, 1024], strides = [1, 1]} : vector<2x1152xf32> to vector<2x1024xf32>
    %2 = vector.extract_strided_slice %0 {offsets = [0, 1], sizes = [2, 1024], strides = [1, 1]} : vector<2x1152xf32> to vector<2x1024xf32>
    %3 = vector.extract_strided_slice %0 {offsets = [0, 2], sizes = [2, 1024], strides = [1, 1]} : vector<2x1152xf32> to vector<2x1024xf32>
    %4 = vector.extract_strided_slice %0 {offsets = [0, 30], sizes = [2, 1024], strides = [1, 1]} : vector<2x1152xf32> to vector<2x1024xf32>
    %5 = vector.extract_strided_slice %0 {offsets = [0, 31], sizes = [2, 1024], strides = [1, 1]} : vector<2x1152xf32> to vector<2x1024xf32>
    %6 = vector.extract_strided_slice %0 {offsets = [0, 32], sizes = [2, 1024], strides = [1, 1]} : vector<2x1152xf32> to vector<2x1024xf32>
    %7 = vector.extract_strided_slice %0 {offsets = [0, 60], sizes = [2, 1024], strides = [1, 1]} : vector<2x1152xf32> to vector<2x1024xf32>
    %8 = vector.extract_strided_slice %0 {offsets = [0, 61], sizes = [2, 1024], strides = [1, 1]} : vector<2x1152xf32> to vector<2x1024xf32>
    %9 = vector.extract_strided_slice %0 {offsets = [0, 62], sizes = [2, 1024], strides = [1, 1]} : vector<2x1152xf32> to vector<2x1024xf32>
    %cst = arith.constant 0.000000e+00 : f32
    %10 = vector.broadcast %cst : f32 to vector<2x10xf32>
    %c0_i32 = arith.constant 0 : i32
    %c64_i32 = arith.constant 64 : i32
    %11 = arith.addi %c0_i32, %c64_i32 : i32
    %c1_i32 = arith.constant 1 : i32
    %12 = scf.for %arg7 = %c0_i32 to %11 step %c1_i32 iter_args(%arg8 = %10) -> (vector<2x10xf32>)  : i32 {
      %c9_i32 = arith.constant 9 : i32
      %17 = arith.muli %arg7, %c9_i32 : i32
      %c0_i32_6 = arith.constant 0 : i32
      %18 = arith.addi %17, %c0_i32_6 : i32
      %19 = arith.index_cast %18 : i32 to index
      %20 = memref.load %arg2[%19] : memref<576xf32, #tpu.memory_space<smem>>
      %21 = vector.broadcast %20 : f32 to vector<2x1024xf32>
      %22 = arith.mulf %1, %21 : vector<2x1024xf32>
      %c9_i32_7 = arith.constant 9 : i32
      %23 = arith.muli %arg7, %c9_i32_7 : i32
      %c1_i32_8 = arith.constant 1 : i32
      %24 = arith.addi %23, %c1_i32_8 : i32
      %25 = arith.index_cast %24 : i32 to index
      %26 = memref.load %arg2[%25] : memref<576xf32, #tpu.memory_space<smem>>
      %27 = vector.broadcast %26 : f32 to vector<2x1024xf32>
      %28 = arith.mulf %2, %27 : vector<2x1024xf32>
      %29 = arith.addf %22, %28 : vector<2x1024xf32>
      %c9_i32_9 = arith.constant 9 : i32
      %30 = arith.muli %arg7, %c9_i32_9 : i32
      %c2_i32 = arith.constant 2 : i32
      %31 = arith.addi %30, %c2_i32 : i32
      %32 = arith.index_cast %31 : i32 to index
      %33 = memref.load %arg2[%32] : memref<576xf32, #tpu.memory_space<smem>>
      %34 = vector.broadcast %33 : f32 to vector<2x1024xf32>
      %35 = arith.mulf %3, %34 : vector<2x1024xf32>
      %36 = arith.addf %29, %35 : vector<2x1024xf32>
      %c9_i32_10 = arith.constant 9 : i32
      %37 = arith.muli %arg7, %c9_i32_10 : i32
      %c3_i32 = arith.constant 3 : i32
      %38 = arith.addi %37, %c3_i32 : i32
      %39 = arith.index_cast %38 : i32 to index
      %40 = memref.load %arg2[%39] : memref<576xf32, #tpu.memory_space<smem>>
      %41 = vector.broadcast %40 : f32 to vector<2x1024xf32>
      %42 = arith.mulf %4, %41 : vector<2x1024xf32>
      %43 = arith.addf %36, %42 : vector<2x1024xf32>
      %c9_i32_11 = arith.constant 9 : i32
      %44 = arith.muli %arg7, %c9_i32_11 : i32
      %c4_i32 = arith.constant 4 : i32
      %45 = arith.addi %44, %c4_i32 : i32
      %46 = arith.index_cast %45 : i32 to index
      %47 = memref.load %arg2[%46] : memref<576xf32, #tpu.memory_space<smem>>
      %48 = vector.broadcast %47 : f32 to vector<2x1024xf32>
      %49 = arith.mulf %5, %48 : vector<2x1024xf32>
      %50 = arith.addf %43, %49 : vector<2x1024xf32>
      %c9_i32_12 = arith.constant 9 : i32
      %51 = arith.muli %arg7, %c9_i32_12 : i32
      %c5_i32 = arith.constant 5 : i32
      %52 = arith.addi %51, %c5_i32 : i32
      %53 = arith.index_cast %52 : i32 to index
      %54 = memref.load %arg2[%53] : memref<576xf32, #tpu.memory_space<smem>>
      %55 = vector.broadcast %54 : f32 to vector<2x1024xf32>
      %56 = arith.mulf %6, %55 : vector<2x1024xf32>
      %57 = arith.addf %50, %56 : vector<2x1024xf32>
      %c9_i32_13 = arith.constant 9 : i32
      %58 = arith.muli %arg7, %c9_i32_13 : i32
      %c6_i32 = arith.constant 6 : i32
      %59 = arith.addi %58, %c6_i32 : i32
      %60 = arith.index_cast %59 : i32 to index
      %61 = memref.load %arg2[%60] : memref<576xf32, #tpu.memory_space<smem>>
      %62 = vector.broadcast %61 : f32 to vector<2x1024xf32>
      %63 = arith.mulf %7, %62 : vector<2x1024xf32>
      %64 = arith.addf %57, %63 : vector<2x1024xf32>
      %c9_i32_14 = arith.constant 9 : i32
      %65 = arith.muli %arg7, %c9_i32_14 : i32
      %c7_i32 = arith.constant 7 : i32
      %66 = arith.addi %65, %c7_i32 : i32
      %67 = arith.index_cast %66 : i32 to index
      %68 = memref.load %arg2[%67] : memref<576xf32, #tpu.memory_space<smem>>
      %69 = vector.broadcast %68 : f32 to vector<2x1024xf32>
      %70 = arith.mulf %8, %69 : vector<2x1024xf32>
      %71 = arith.addf %64, %70 : vector<2x1024xf32>
      %c9_i32_15 = arith.constant 9 : i32
      %72 = arith.muli %arg7, %c9_i32_15 : i32
      %c8_i32 = arith.constant 8 : i32
      %73 = arith.addi %72, %c8_i32 : i32
      %74 = arith.index_cast %73 : i32 to index
      %75 = memref.load %arg2[%74] : memref<576xf32, #tpu.memory_space<smem>>
      %76 = vector.broadcast %75 : f32 to vector<2x1024xf32>
      %77 = arith.mulf %9, %76 : vector<2x1024xf32>
      %78 = arith.addf %71, %77 : vector<2x1024xf32>
      %79 = arith.index_cast %arg7 : i32 to index
      %80 = memref.load %arg3[%79] : memref<64xf32, #tpu.memory_space<smem>>
      %81 = vector.broadcast %80 : f32 to vector<2x1024xf32>
      %82 = arith.addf %78, %81 : vector<2x1024xf32>
      %cst_16 = arith.constant 0.000000e+00 : f32
      %83 = vector.broadcast %cst_16 : f32 to vector<2x1024xf32>
      %84 = arith.maximumf %82, %83 : vector<2x1024xf32>
      %85 = arith.truncf %84 : vector<2x1024xf32> to vector<2x1024xbf16>
      %86 = arith.index_cast %arg7 : i32 to index
      %c0_17 = arith.constant 0 : index
      %c0_18 = arith.constant 0 : index
      %87 = vector.load %arg4[%86, %c0_17, %c0_18] : memref<64x10x1024xbf16, #tpu.memory_space<vmem>>, vector<1x10x1024xbf16>
      %88 = vector.shape_cast %87 : vector<1x10x1024xbf16> to vector<10x1024xbf16>
      %cst_19 = arith.constant dense<0.000000e+00> : vector<2x10xf32>
      %89 = tpu.matmul %85, %88, %cst_19 {dimension_numbers = #tpu.dot_dimension_numbers<[1], [1], [0], [0], [0, 0, 1, 0], [], []>} : vector<2x1024xbf16>, vector<10x1024xbf16>, vector<2x10xf32> -> vector<2x10xf32>
      %90 = arith.addf %arg8, %89 : vector<2x10xf32>
      scf.yield %90 : vector<2x10xf32>
    }
    %c64_i32_1 = arith.constant 64 : i32
    %c0_2 = arith.constant 0 : index
    %c0_3 = arith.constant 0 : index
    %13 = vector.load %arg5[%c0_2, %c0_3] : memref<1x10xf32, #tpu.memory_space<vmem>>, vector<1x10xf32>
    %14 = vector.broadcast %13 : vector<1x10xf32> to vector<2x10xf32>
    %15 = arith.addf %12, %14 : vector<2x10xf32>
    %c0_4 = arith.constant 0 : index
    %c0_5 = arith.constant 0 : index
    %16 = vector.load %arg6[%c0_4, %c0_5] : memref<2x10xf32, #tpu.memory_space<vmem>>, vector<2x10xf32>
    tpu.vector_store %arg6[%c0_4, %c0_5], %15 {strides = array<i32>} : memref<2x10xf32, #tpu.memory_space<vmem>>, vector<2x10xf32>,
    return
  }
  func.func @transform_0(%arg0: i32) -> (i32, i32) {
    %c0_i32 = arith.constant 0 : i32
    %c0_i32_0 = arith.constant 0 : i32
    return %arg0, %c0_i32 : i32, i32
  }
  func.func @transform_1(%arg0: i32) -> i32 {
    %c0_i32 = arith.constant 0 : i32
    %c0_i32_0 = arith.constant 0 : i32
    return %c0_i32 : i32
  }
  func.func @transform_2(%arg0: i32) -> i32 {
    %c0_i32 = arith.constant 0 : i32
    %c0_i32_0 = arith.constant 0 : i32
    return %c0_i32 : i32
  }
  func.func @transform_3(%arg0: i32) -> (i32, i32, i32) {
    %c0_i32 = arith.constant 0 : i32
    %c0_i32_0 = arith.constant 0 : i32
    %c0_i32_1 = arith.constant 0 : i32
    %c0_i32_2 = arith.constant 0 : i32
    return %c0_i32, %c0_i32_0, %c0_i32_1 : i32, i32, i32
  }
  func.func @transform_4(%arg0: i32) -> (i32, i32) {
    %c0_i32 = arith.constant 0 : i32
    %c0_i32_0 = arith.constant 0 : i32
    %c0_i32_1 = arith.constant 0 : i32
    return %c0_i32, %c0_i32_0 : i32, i32
  }
  func.func @transform_5(%arg0: i32) -> (i32, i32) {
    %c0_i32 = arith.constant 0 : i32
    %c0_i32_0 = arith.constant 0 : i32
    return %arg0, %c0_i32 : i32, i32
  }
}

</mosaic_0001>

<bundles_post_ra>
// kernel: cnn_1lay_fulltrain_forward.1
= control target key start
LH: loop header
LB: loop body
LE: loop exit
PB: predicated region body
PF: predicated region fallthrough
CT: control target
= control target key end

     0   :  { %10 = vsyncpa [#allocation4], 0  ;;  %s942_s0 = inlined_call_operand.vmem [shape: f32[2,1152], index: 0, kind: input, shape index: {}]   ;;  %s943_s1 = inlined_call_operand.vmem [shape: f32[576], index: 1, kind: input, shape index: {}]   ;;  %s944_s2 = inlined_call_operand.vmem [shape: f32[64], index: 2, kind: input, shape index: {}]   ;;  %s945_s3 = inlined_call_operand.vmem [shape: bf16[64,10,1024], index: 3, kind: input, shape index: {}]   ;;  %s946_s4 = inlined_call_operand.vmem [shape: f32[1,10], index: 4, kind: input, shape index: {}]   ;;  %s947_s5 = inlined_call_operand.hbm [shape: f32[2,10], index: 5, kind: output, shape index: {}]  }
   0x1   :  { %11 = vsyncpa [#allocation6], 0 }
   0x2   :  { %12 = vsyncpa [#allocation3], 0  ;;  %s21_s20 = sshll.u32 %s943_s1, 4  ;;  %s31_s23 = sshll.u32 %s944_s2, 4  ;;  %s22_s20 = int_to_ptr.vmem [resolvable:$true] %s21_s20  ;;  %s32_s23 = int_to_ptr.vmem [resolvable:$true] %s31_s23 }
   0x3   :  { %s625_s24 = scalar_lea.vmem %s22_s20, 80  ;;  %s629_s25 = scalar_lea.vmem %s22_s20, 128 }
   0x4   :  { %p626_p0 = scmp.ne.s32.totalorder %s22_s20, %s625_s24  ;;  %p630_p1 = scmp.lt.s32.totalorder %s22_s20, %s22_s20 }
   0x5   :  { %p631_p2 = scmp.lt.s32.totalorder %s629_s25, %s625_s24 }
   0x7   :  { %p632_p3 = por %p631_p2, %p630_p1 }
   0x9   :  { %p633_p4 = pnand %p632_p3, %p626_p0 }
   0xb   :  { %636 = shalt.err (!%p633_p4)
}
   0xc   :  { %s693_s26 = smov [#allocation2]   ;;  %s637_s27 = scalar_lea.vmem %s32_s23, 16 }
   0xd   :  { %24 = dma.vmem_to_smem %s22_s20, 80, %s693_s26, [#allocation4]  }
   0xe   :  { %p638_p5 = scmp.ne.s32.totalorder %s32_s23, %s637_s27  ;;  %p642_p6 = scmp.lt.s32.totalorder %s32_s23, %s32_s23 }
   0xf   :  { %p643_p7 = scmp.lt.s32.totalorder %s637_s27, %s637_s27 }
  0x11   :  { %p644_p8 = por %p643_p7, %p642_p6 }
  0x13   :  { %p645_p9 = pnand %p644_p8, %p638_p5 }
  0x15   :  { %648 = shalt.err (!%p645_p9)
}
  0x16   :  { %s694_s1 = smov [#allocation5]  }
  0x17   :  { %34 = dma.vmem_to_smem %s32_s23, 16, %s694_s1, [#allocation6]  }
  0x18   :  { %679 = dma.done.wait [#allocation4], 80  }
  0x19   :  { %680 = vsyncadd [#allocation4], 4294967216 }
  0x1a   :  { %681 = dma.done.wait [#allocation6], 16  }
  0x1b   :  { %682 = vsyncadd [#allocation6], 4294967280 }
  0x1c   :  { %45 = sfence }
  0x1d   :  { %v744_v0 = vld [vmem:[%s942_s0] sm:$0xff]  ;;  %v749_v1 = vld [vmem:[%s942_s0 + $0x8] sm:$0xff]  ;;  %v754_v2 = vld [vmem:[%s942_s0 + $0x10] sm:$0x3]  ;;  %v756_v3 = vmov 0.0   ;;  %s758_s8 = smov 0  }
  0x1e LB: > { %s767_s9 = smul.u32 9, %s691_s8  ;;  %s695_s18 = smov 126   ;;  %vm80_vm0 = vcmask 1045504   ;;  %vm82_vm1 = vcmask 1039360   ;;  %vm109_vm2 = vcmask 1031168   ;;  %vm136_vm3 = vcmask 801792   ;;  %s691_s8 = sphi %s758_s8, %s55_s8   ;;  %v687_v3 = vphi %v756_v3, %v948_v3  }
  0x1f   : > { %s696_s19 = smov 127   ;;  %s697_s22 = smov 98   ;;  %vm163_vm4 = vcmask 793600   ;;  %vm190_vm5 = vcmask 785408   ;;  %vm217_vm6 = vcmask 556032   ;;  %vm244_vm7 = vcmask 547840  }
  0x20   : > { %s90_s0 = sadd.s32 2, %s767_s9  ;;  %s62_s10 = sadd.s32 1, %s767_s9  ;;  %vm271_vm8 = vcmask 539648  }
  0x21   : > { %s91_s11 = sld [smem:[#allocation2 + %s90_s0]]  ;;  %s117_s13 = sadd.s32 3, %s767_s9 }
  0x22   : > { %s63_s12 = sld [smem:[#allocation2 + %s62_s10]]  ;;  %s144_s15 = sadd.s32 4, %s767_s9 }
  0x23   : > { %s118_s14 = sld [smem:[#allocation2 + %s117_s13]]  ;;  %s171_s17 = sadd.s32 5, %s767_s9 }
  0x24   : > { %s145_s16 = sld [smem:[#allocation2 + %s144_s15]]  ;;  %s198_s21 = sadd.s32 6, %s767_s9 }
  0x25   : > { %s172_s20 = sld [smem:[#allocation2 + %s171_s17]]  ;;  %s225_s24 = sadd.s32 7, %s767_s9 }
  0x26   : > { %s199_s23 = sld [smem:[#allocation2 + %s198_s21]]  ;;  %s698_s25 = smov 97  }
  0x27   : > { %v92_v4 = vstv %s91_s11  ;;  %s226_s26 = sld [smem:[#allocation2 + %s225_s24]]  ;;  %s699_s27 = smov 96  }
  0x28   : > { %v64_v5 = vstv %s63_s12  ;;  %v93_v6 = vmul.f32 %v92_v4, %v744_v0  ;;  %v94_v8 = vmul.f32 %v92_v4, %v749_v1  ;;  %v95_v19 = vmul.f32 %v92_v4, %v754_v2  ;;  %s252_s1 = sadd.s32 8, %s767_s9  ;;  %s700_s28 = smov 68  }
  0x29   : > { %v65_v7 = vmul.f32 %v64_v5, %v744_v0  ;;  %v66_v9 = vmul.f32 %v64_v5, %v749_v1  ;;  %v119_v10 = vstv %s118_s14  ;;  %v67_v18 = vmul.f32 %v64_v5, %v754_v2  ;;  %s253_s2 = sld [smem:[#allocation2 + %s252_s1]]  ;;  %s596_s29 = sshll.u32 %s691_s8, 6 }
  0x2a   : > { %99 = vrot.lane.b32.xlu1 %v93_v6, %s695_s18  ;;  %v121_v11 = vmul.f32 %v119_v10, %v749_v1  ;;  %v120_v12 = vmul.f32 %v119_v10, %v744_v0  ;;  %v146_v13 = vstv %s145_s16  ;;  %v122_v26 = vmul.f32 %v119_v10, %v754_v2  ;;  %s701_s30 = smov 67   ;;  %s812_s0 = scalar_lea.vmem %s945_s3, %s596_s29 }
  0x2b   : > { %71 = vrot.lane.b32.xlu0 %v65_v7, %s696_s19  ;;  %v148_v14 = vmul.f32 %v146_v13, %v749_v1  ;;  %v147_v15 = vmul.f32 %v146_v13, %v744_v0  ;;  %v173_v16 = vstv %s172_s20  ;;  %v149_v27 = vmul.f32 %v146_v13, %v754_v2  ;;  %v340_v30 = vld [vmem:[%s812_s0] sm:$0xff]  ;;  %v341_v34 = vld [vmem:[%s812_s0 + $0x8] sm:$0xff]  ;;  %s702_s10 = smov 66   ;;  %s852_s11 = sld [smem:[#allocation2 + %s767_s9]] }
  0x2c   : > { %v174_v17 = vmul.f32 %v173_v16, %v744_v0  ;;  %v175_v20 = vmul.f32 %v173_v16, %v749_v1  ;;  %v200_v21 = vstv %s199_s23  ;;  %v344_v31 = vld [vmem:[%s812_s0 + $0x20] sm:$0x11]  ;;  %v345_v35 = vld [vmem:[%s812_s0 + $0x28] sm:$0x11]  ;;  %v176_v41 = vmul.f32 %v173_v16, %v754_v2  ;;  %v829_v44 = vld [vmem:[%s812_s0 + $0x10] sm:$0xff]  ;;  %s886_s9 = sld [smem:[#allocation5 + %s691_s8]] }
  0x2d   : > { %v202_v22 = vmul.f32 %v200_v21, %v749_v1  ;;  %v201_v23 = vmul.f32 %v200_v21, %v744_v0  ;;  %v227_v24 = vstv %s226_s26  ;;  %v588_v32 = vcombine.high %v340_v30, %v344_v31  ;;  %v832_v45 = vld [vmem:[%s812_s0 + $0x30] sm:$0x11]  ;;  %v839_v48 = vld [vmem:[%s812_s0 + $0x18] sm:$0xff]  ;;  %s55_s8 = sadd.s32 1, %s691_s8  }
  0x2e   : > { %101 = vrot.lane.b32.xlu1 %v94_v8, %s695_s18  ;;  %v228_v25 = vmul.f32 %v227_v24, %v744_v0  ;;  %v229_v28 = vmul.f32 %v227_v24, %v749_v1  ;;  %v587_v33 = vcombine.low %v340_v30, %v344_v31  ;;  %v590_v38 = vcombine.high %v341_v34, %v345_v35  ;;  %v842_v49 = vld [vmem:[%s812_s0 + $0x38] sm:$0x11]  ;;  %p52_p10 = scmp.ge.s32.totalorder %s55_s8, 64  }
  0x2f   : > { %73 = vrot.lane.b32.xlu0 %v66_v9, %s696_s19  ;;  %v254_v29 = vstv %s253_s2  ;;  %388 = vmatprep.subr.bf16.mxu0 %v588_v32  ;;  %v589_v39 = vcombine.low %v341_v34, %v345_v35  ;;  %v203_v40 = vmul.f32 %v200_v21, %v754_v2  ;;  %v230_v43 = vmul.f32 %v227_v24, %v754_v2  ;;  %s704_s14 = smov (%p52_p10), [#allocation7]  }
  0x30   : > { %v256_v36 = vmul.f32 %v254_v29, %v749_v1  ;;  %v255_v37 = vmul.f32 %v254_v29, %v744_v0  ;;  %389 = vmatpush1.bf16.xpose.msra.mxu0 %v587_v33  ;;  %428 = vmatprep.subr.bf16.mxu1 %v590_v38  ;;  %v257_v42 = vmul.f32 %v254_v29, %v754_v2  ;;  %vm557_vm9 = vcmask (%p52_p10), 74752   ;;  %s565_s15 = sshll.u32 (%p52_p10), %s704_s14, 4  ;;  %s566_s15 = int_to_ptr.vmem [resolvable:$true] %s565_s15 }
  0x31   : > { %429 = vmatpush1.bf16.xpose.msra.mxu1 %v589_v39  ;;  %v592_v46 = vcombine.high %v829_v44, %v832_v45  ;;  %v591_v47 = vcombine.low %v829_v44, %v832_v45  ;;  %v593_v50 = vcombine.low %v839_v48, %v842_v49  ;;  %v594_v51 = vcombine.high %v839_v48, %v842_v49  ;;  %s649_s16 = scalar_lea.vmem (%p52_p10), %s566_s15, 32  ;;  %p654_p12 = scmp.lt.s32.totalorder (%p52_p10), %s566_s15, %s566_s15 }
  0x32   : > { %128 = vrot.lane.b32.xlu1 %v121_v11, %s697_s22  ;;  %v59_v62 = vstv %s852_s11  ;;  %p650_p11 = scmp.ne.s32.totalorder (%p52_p10), %s566_s15, %s649_s16  ;;  %p655_p13 = scmp.lt.s32.totalorder (%p52_p10), %s649_s16, %s649_s16 }
  0x33   : > { %126 = vrot.lane.b32.xlu0 %v120_v12, %s697_s22  ;;  %468 = vmatprep.subr.bf16.mxu0 %v592_v46  ;;  %v60_v7 = vmul.f32 %v59_v62, %v744_v0 }
  0x34   : > { %508 = vmatprep.subr.bf16.mxu1 %v594_v51  ;;  %p656_p0 = por (%p52_p10), %p655_p13, %p654_p12 }
  0x36   : > { %155 = vrot.lane.b32.xlu1 %v148_v14, %s698_s25  ;;  %p657_p1 = pnand (%p52_p10), %p656_p0, %p650_p11 }
  0x37   : > { %153 = vrot.lane.b32.xlu0 %v147_v15, %s698_s25 }
  0x3a   : > { %180 = vrot.lane.b32.xlu1 %v174_v17, %s699_s27 }
  0x3b   : > { %75 = vrot.lane.b32.xlu0 %v67_v18, %s696_s19 }
  0x3e   : > { %103 = vrot.lane.b32.xlu1 %v95_v19, %s695_s18 }
  0x3f   : > { %182 = vrot.lane.b32.xlu0 %v175_v20, %s699_s27 }
  0x42   : > { %209 = vrot.lane.b32.xlu1 %v202_v22, %s700_s28 }
  0x43   : > { %207 = vrot.lane.b32.xlu0 %v201_v23, %s700_s28 }
  0x46   : > { %234 = vrot.lane.b32.xlu1 %v228_v25, %s701_s30 }
  0x47   : > { %130 = vrot.lane.b32.xlu0 %v122_v26, %s697_s22 }
  0x4a   : > { %157 = vrot.lane.b32.xlu1 %v149_v27, %s698_s25 }
  0x4b   : > { %236 = vrot.lane.b32.xlu0 %v229_v28, %s701_s30 }
  0x4e   : > { %263 = vrot.lane.b32.xlu1 %v256_v36, %s702_s10 }
  0x4f   : > { %261 = vrot.lane.b32.xlu0 %v255_v37, %s702_s10  ;;  %v61_v37 = vmul.f32 %v59_v62, %v749_v1  ;;  %v291_v62 = vlaneseq }
  0x52   : > { %211 = vrot.lane.b32.xlu1 %v203_v40, %s700_s28 }
  0x53   : > { %184 = vrot.lane.b32.xlu0 %v176_v41, %s699_s27 }
  0x56   : > { %265 = vrot.lane.b32.xlu1 %v257_v42, %s702_s10 }
  0x57   : > { %238 = vrot.lane.b32.xlu0 %v230_v43, %s701_s30 }
  0x9c   : > { %v100_v52 = vpop.permute.xlu1 %99 }
  0x9d   : > { %v72_v53 = vpop.permute.xlu0 %71  ;;  %v105_v9 = vrot.slane %v100_v52, 2 }
  0x9e   : > { %v77_v61 = vrot.slane %v72_v53, 2 }
  0xa0   : > { %v849_v54 = vpop.permute.xlu1 %101 }
  0xa1   : > { %v74_v55 = vpop.permute.xlu0 %73  ;;  %v106_v6 = vrot.slane %v849_v54, 2 }
  0xa2   : > { %v78_v58 = vrot.slane %v74_v55, 2 }
  0xa3   : > { %v108_v14 = vsel %vm80_vm0, %v105_v9, %v106_v6 }
  0xa4   : > { %v854_v56 = vpop.permute.xlu1 %128  ;;  %v81_v63 = vsel %vm80_vm0, %v77_v61, %v78_v58  ;;  %v110_v21 = vsel %vm109_vm2, %v100_v52, %v108_v14 }
  0xa5   : > { %v127_v57 = vpop.permute.xlu0 %126  ;;  %v83_v8 = vsel %vm82_vm1, %v72_v53, %v81_v63  ;;  %v133_v10 = vrot.slane %v854_v56, 2 }
  0xa6   : > { %v132_v11 = vrot.slane %v127_v57, 2  ;;  %v88_v15 = vadd.f32 %v83_v8, %v60_v7 }
  0xa8   : > { %v856_v59 = vpop.permute.xlu1 %155  ;;  %v135_v18 = vsel %vm80_vm0, %v132_v11, %v133_v10  ;;  %v115_v24 = vadd.f32 %v110_v21, %v88_v15 }
  0xa9   : > { %v154_v60 = vpop.permute.xlu0 %153  ;;  %v160_v16 = vrot.slane %v856_v59, 2  ;;  %v137_v26 = vsel %vm136_vm3, %v127_v57, %v135_v18  ;;  %v292_v18 = vshrl.u32 %v291_v62, 7 }
  0xaa   : > { %v159_v17 = vrot.slane %v154_v60, 2  ;;  %v142_v36 = vadd.f32 %v137_v26, %v115_v24  ;;  %v280_v24 = vstv %s886_s9 }
  0xac   : > { %v181_v4 = vpop.permute.xlu1 %180  ;;  %v162_v25 = vsel %vm80_vm0, %v159_v17, %v160_v16 }
  0xad   : > { %v76_v5 = vpop.permute.xlu0 %75  ;;  %v186_v27 = vrot.slane %v181_v4, 2  ;;  %v164_v32 = vsel %vm163_vm4, %v154_v60, %v162_v25  ;;  %v703_v60 = vmov 1983009808  }
  0xae   : > { %v79_v22 = vrot.slane %v76_v5, 2  ;;  %v169_v40 = vadd.f32 %v164_v32, %v142_v36  ;;  %v289_v61 = vunpack.c.l.s4 %v703_v60 }
  0xb0   : > { %v104_v12 = vpop.permute.xlu1 %103  ;;  %v84_v33 = vsel %vm80_vm0, %v78_v58, %v79_v22  ;;  %v290_v17 = vunpack.c.0.s8 %v289_v61 }
  0xb1   : > { %v864_v13 = vpop.permute.xlu0 %182  ;;  %v107_v34 = vrot.slane %v104_v12, 2  ;;  %v85_v41 = vsel %vm82_vm1, %v74_v55, %v84_v33 }
  0xb2   : > { %v187_v23 = vrot.slane %v864_v13, 2  ;;  %v89_v5 = vadd.f32 %v85_v41, %v61_v37  ;;  %v293_v32 = vsub.s32 %v290_v17, %v292_v18 }
  0xb3   : > { %v111_v51 = vsel %vm80_vm0, %v106_v6, %v107_v34 }
  0xb4   : > { %v869_v19 = vpop.permute.xlu1 %209  ;;  %v189_v35 = vsel %vm80_vm0, %v186_v27, %v187_v23  ;;  %v112_v7 = vsel %vm109_vm2, %v849_v54, %v111_v51 }
  0xb5   : > { %v208_v20 = vpop.permute.xlu0 %207  ;;  %v214_v28 = vrot.slane %v869_v19, 2  ;;  %v191_v42 = vsel %vm190_vm5, %v181_v4, %v189_v35 }
  0xb6   : > { %v213_v29 = vrot.slane %v208_v20, 2  ;;  %v196_v63 = vadd.f32 %v191_v42, %v169_v40 }
  0xb8   : > { %v235_v30 = vpop.permute.xlu1 %234  ;;  %v216_v38 = vsel %vm80_vm0, %v213_v29, %v214_v28 }
  0xb9   : > { %v131_v31 = vpop.permute.xlu0 %130  ;;  %v240_v52 = vrot.slane %v235_v30, 2  ;;  %v218_v58 = vsel %vm217_vm6, %v208_v20, %v216_v38  ;;  %v116_v20 = vadd.f32 %v112_v7, %v89_v5 }
  0xba   : > { %v134_v39 = vrot.slane %v131_v31, 2  ;;  %v223_v11 = vadd.f32 %v218_v58, %v196_v63 }
  0xbc   : > { %v158_v43 = vpop.permute.xlu1 %157  ;;  %v138_v55 = vsel %vm80_vm0, %v133_v10, %v134_v39 }
  0xbd   : > { %v237_v46 = vpop.permute.xlu0 %236  ;;  %v161_v53 = vrot.slane %v158_v43, 2  ;;  %v139_v10 = vsel %vm136_vm3, %v854_v56, %v138_v55 }
  0xbe   : > { %v241_v57 = vrot.slane %v237_v46, 2 }
  0xbf   : > { %v165_v12 = vsel %vm80_vm0, %v160_v16, %v161_v53  ;;  %v143_v16 = vadd.f32 %v139_v10, %v116_v20 }
  0xc0   : > { %v243_v4 = vsel %vm80_vm0, %v240_v52, %v241_v57  ;;  %v264_v8 = vpop.permute.xlu1 %263  ;;  %v166_v22 = vsel %vm163_vm4, %v856_v59, %v165_v12 }
  0xc1   : > { %v245_v6 = vsel %vm244_vm7, %v235_v30, %v243_v4  ;;  %v262_v9 = vpop.permute.xlu0 %261  ;;  %v268_v14 = vrot.slane %v264_v8, 2  ;;  %v170_v56 = vadd.f32 %v166_v22, %v143_v16 }
  0xc2   : > { %v267_v15 = vrot.slane %v262_v9, 2  ;;  %v250_v21 = vadd.f32 %v245_v6, %v223_v11 }
  0xc4   : > { %v270_v54 = vsel %vm80_vm0, %v267_v15, %v268_v14  ;;  %v212_v26 = vpop.permute.xlu1 %211 }
  0xc5   : > { %v272_v25 = vsel %vm271_vm8, %v262_v9, %v270_v54  ;;  %v185_v27 = vpop.permute.xlu0 %184  ;;  %v215_v30 = vrot.slane %v212_v26, 2 }
  0xc6   : > { %v277_v29 = vadd.f32 %v272_v25, %v250_v21  ;;  %v188_v31 = vrot.slane %v185_v27, 2 }
  0xc7   : > { %v219_v34 = vsel %vm80_vm0, %v214_v28, %v215_v30 }
  0xc8   : > { %v281_v33 = vadd.f32 %v280_v24, %v277_v29  ;;  %v192_v35 = vsel %vm80_vm0, %v187_v23, %v188_v31  ;;  %v266_v36 = vpop.permute.xlu1 %265  ;;  %v220_v42 = vsel %vm217_vm6, %v869_v19, %v219_v34 }
  0xc9   : > { %v193_v59 = vsel %vm190_vm5, %v864_v13, %v192_v35  ;;  %v239_v37 = vpop.permute.xlu0 %238  ;;  %v269_v39 = vrot.slane %v266_v36, 2 }
  0xca   : > { %v197_v38 = vadd.f32 %v193_v59, %v170_v56  ;;  %v242_v40 = vrot.slane %v239_v37, 2  ;;  %v283_v41 = vmax.f32 %v281_v33, 0.0 }
  0xcb   : > { %v273_v43 = vsel %vm80_vm0, %v268_v14, %v269_v39 }
  0xcc   : > { %v224_v51 = vadd.f32 %v220_v42, %v197_v38  ;;  %v246_v28 = vsel %vm80_vm0, %v241_v57, %v242_v40  ;;  %v294_v52 = vrot.slane %v283_v41, %v293_v32  ;;  %v287_v53 = vcombine.high %v283_v41, %v283_v41 }
  0xcd   : > { %v247_v23 = vsel %vm244_vm7, %v237_v46, %v246_v28  ;;  %v274_v60 = vsel %vm271_vm8, %v264_v8, %v273_v43 }
  0xce   : > { %v251_v58 = vadd.f32 %v247_v23, %v224_v51  ;;  %v302_v13 = vcombine.high %v294_v52, %v294_v52  ;;  %v301_v61 = vrot.slane %v287_v53, %v293_v32  ;;  %v329_v55 = vpack.c.bf16 %v294_v52, %v294_v52 }
  0xd0   : > { %v278_v62 = vadd.f32 %v274_v60, %v251_v58  ;;  %v330_v63 = vpack.c.bf16 %v302_v13, %v302_v13  ;;  %v303_v4 = vcombine.high %v301_v61, %v301_v61  ;;  %v331_v7 = vpack.c.bf16 %v301_v61, %v301_v61 }
  0xd2   : > { %420 = vmatprep.mubr.bf16.mxu0 %v330_v63  ;;  %v282_v19 = vadd.f32 %v280_v24, %v278_v62  ;;  %v332_v5 = vpack.c.bf16 %v303_v4, %v303_v4 }
  0xd3   : > { %421 = vmatmul.mubr.bf16.vlgmr.msra.gmra.mrb[0].mxu0 %v329_v55 }
  0xd4   : > { %469 = vmatpush1.bf16.xpose.msra.mxu0 %v591_v47  ;;  %v284_v46 = vmax.f32 %v282_v19, 0.0  ;;  %460 = vmatprep.mubr.bf16.mxu1 %v332_v5 }
  0xd5   : > { %461 = vmatmul.mubr.bf16.vlgmr.msra.gmra.mrb[0].mxu1 %v331_v7 }
  0xd6   : > { %v311_v57 = vrot.slane %v284_v46, %v293_v32  ;;  %v304_v6 = vcombine.high %v284_v46, %v284_v46  ;;  %509 = vmatpush1.bf16.xpose.msra.mxu1 %v593_v50 }
  0xd8   : > { %v319_v8 = vcombine.high %v311_v57, %v311_v57  ;;  %v318_v9 = vrot.slane %v304_v6, %v293_v32  ;;  %v333_v14 = vpack.c.bf16 %v311_v57, %v311_v57  ;;  %v595_v32 = vld [vmem:[%s946_s4] ss:$0 sm:$0xff] (%p52_p10) }
  0xda   : > { %v334_v11 = vpack.c.bf16 %v319_v8, %v319_v8  ;;  %v320_v12 = vcombine.high %v318_v9, %v318_v9  ;;  %v335_v10 = vpack.c.bf16 %v318_v9, %v318_v9 }
  0xdc   : > { %500 = vmatprep.mubr.bf16.mxu0 %v334_v11  ;;  %v336_v15 = vpack.c.bf16 %v320_v12, %v320_v12 }
  0xdd   : > { %501 = vmatmul.mubr.bf16.vlgmr.msra.gmra.mrb[4].mxu0 %v333_v14 }
  0xde   : > { %540 = vmatprep.mubr.bf16.mxu1 %v336_v15 }
  0xdf   : > { %541 = vmatmul.mubr.bf16.vlgmr.msra.gmra.mrb[4].mxu1 %v335_v10 }
 0x1a6   : > { %v422_v44 = vpop.f32.mrb[0].mxu0 }
 0x1a7   : > { %v424_v45 = vpop.f32.mrb[1].mxu0 }
 0x1a8   : > { %v425_v47 = vpop.f32.mrb[2].mxu0  ;;  %v462_v17 = vpop.f32.mrb[0].mxu1 }
 0x1a9   : > { %v426_v18 = vpop.f32.mrb[3].mxu0  ;;  %v463_v20 = vadd.f32 %v462_v17, %v422_v44  ;;  %v464_v21 = vpop.f32.mrb[1].mxu1 }
 0x1aa   : > { %v465_v48 = vpop.f32.mrb[2].mxu1 }
 0x1ab   : > { %v466_v49 = vpop.f32.mrb[3].mxu1 }
 0x1b0   : > { %v502_v50 = vpop.f32.mrb[4].mxu0 }
 0x1b1   : > { %v503_v54 = vadd.f32 %v502_v50, %v463_v20  ;;  %v504_v22 = vpop.f32.mrb[5].mxu0  ;;  %54 = sbr.rel (!%p52_p10) target bundleno = 30 (0x1e), region = 56 }
 0x1b2   : > { %v505_v24 = vpop.f32.mrb[6].mxu0  ;;  %v542_v25 = vpop.f32.mrb[4].mxu1 }
 0x1b3   : > { %v543_v26 = vadd.f32 %v542_v25, %v503_v54  ;;  %v506_v27 = vpop.f32.mrb[7].mxu0  ;;  %v544_v16 = vpop.f32.mrb[5].mxu1 }
 0x1b4   : > { %v545_v29 = vpop.f32.mrb[6].mxu1 }
 0x1b5   : > { %v548_v30 = vadd.f32 %v687_v3, %v543_v26   ;;  %v546_v31 = vpop.f32.mrb[7].mxu1 }
 0x1b7   : > { %v948_v3 = vmov %v548_v30  ;;  %v556_v56 = vadd.f32 (%p52_p10), %v595_v32, %v548_v30 }
 0x1b9   :  { %558 = vst.msk [vmem:[#allocation7] sm:$0x3] %vm557_vm9, %v556_v56 }
 0x1ba   :  { %660 = shalt.err (!%p657_p1)
}
 0x1bb   :  { %s661_s3 = scalar_lea.hbm %s947_s5, 32 }
 0x1bc   :  { %p662_p2 = scmp.ne.s32.totalorder %s947_s5, %s661_s3  ;;  %p665_p3 = scmp.lt.u32.totalorder %s661_s3, %s947_s5 }
 0x1be   :  { %p667_p4 = pnand %p665_p3, %p662_p2 }
 0x1c0   :  { %670 = shalt.err (!%p667_p4)
}
 0x1c1   :  { %568 = dma.vmem_to_hbm [thread:$0]  %s566_s15, 32, %s947_s5, [#allocation3]  }
 0x1c2   :  { %683 = dma.done.wait [#allocation3], 32  }
 0x1c3   :  { %684 = vsyncadd [#allocation3], 4294967264 }
 0x1c4   :  { %572 = vsyncpa [#allocation3], 1 }
 0x1c5   :  { %573 = vsyncpa [#allocation4], 1 }
 0x1c6   :  { %574 = vsyncpa [#allocation6], 1 }

</bundles_post_ra>
